<compile_context>
chip_gen: v5e
topology: v5e:2x2
jax: 0.10.0
libtpu: 0.0.40
codegen_flags: <defaults>
</compile_context>

<pallas_src>
import functools
import math

import jax
import jax.numpy as jnp
from jax import lax
from jax.experimental import pallas as pl
from jax.experimental.pallas import tpu as pltpu


def _round_up(x, m):
    return ((x + m - 1) // m) * m


# ---------------------------------------------------------------------------
# Kernel 1: fused K/V projection, computed once over all rows.
# ---------------------------------------------------------------------------
def _kv_proj_kernel(x_ref, wkv_ref, k_ref, v_ref, *, d_pad):
    kv = jnp.dot(x_ref[...], wkv_ref[...], preferred_element_type=jnp.float32)
    k_ref[...] = kv[:, :d_pad].astype(k_ref.dtype)
    v_ref[...] = kv[:, d_pad:].astype(v_ref.dtype)


# ---------------------------------------------------------------------------
# Kernel 2: flash attention over precomputed K/V. Q projection is fused and
# done once per Q-row tile (at ki == 0), held in VMEM across the KV axis.
# ---------------------------------------------------------------------------
def _flash_attn_kernel(xq_ref, wq_ref, k_ref, v_ref, o_ref,
                       q_scr, m_scr, l_scr, acc_scr,
                       *, scale, seq_len, tk, need_mask):
    ki = pl.program_id(1)

    @pl.when(ki == 0)
    def _init():
        q = jnp.dot(xq_ref[...], wq_ref[...],
                    preferred_element_type=jnp.float32)
        # Fold 1/sqrt(d_out) into Q (O(S*d) instead of O(S^2) scaling); keep
        # the MXU operand bf16, accumulate f32.
        q_scr[...] = (q * scale).astype(q_scr.dtype)
        m_scr[...] = jnp.full_like(m_scr, -1e30)
        l_scr[...] = jnp.zeros_like(l_scr)
        acc_scr[...] = jnp.zeros_like(acc_scr)

    # scores = q @ k^T without materializing a transpose (contract last dims).
    s = lax.dot_general(q_scr[...], k_ref[...], (((1,), (1,)), ((), ())),
                        preferred_element_type=jnp.float32)   # [tq, tk] f32

    if need_mask:
        # Mask zero-padded key positions so they get zero softmax weight.
        # (Padding is appended after real rows, so the first KV tile always
        # contains real keys and m becomes finite before any fully-padded tile.)
        kv_pos = ki * tk + lax.broadcasted_iota(jnp.int32, s.shape, 1)
        s = jnp.where(kv_pos < seq_len, s, jnp.float32(-1e30))

    # Online (flash) softmax accumulation across KV tiles, all in f32.
    m_prev = m_scr[...]
    m_new = jnp.maximum(m_prev, jnp.max(s, axis=-1, keepdims=True))
    alpha = jnp.exp(m_prev - m_new)
    p = jnp.exp(s - m_new)
    l_scr[...] = alpha * l_scr[...] + jnp.sum(p, axis=-1, keepdims=True)
    acc_scr[...] = alpha * acc_scr[...] + jnp.dot(
        p.astype(v_ref.dtype), v_ref[...], preferred_element_type=jnp.float32)
    m_scr[...] = m_new

    @pl.when(ki == pl.num_programs(1) - 1)
    def _finalize():
        inv_l = pl.reciprocal(l_scr[...], approx=True)
        o_ref[...] = (acc_scr[...] * inv_l).astype(o_ref.dtype)


def self_attention_v2(x, w_query, w_key, w_value, *, tq=256, tk=512):
    """x: [seq, d_in]; w_*: [d_in, d_out]. Returns [seq, d_out] float32."""
    seq, d_in = x.shape
    d_out = w_query.shape[1]

    d_pad = _round_up(d_out, 128)
    din_pad = _round_up(d_in, 128)

    # Clamp tiles to the (128-aligned) padded sequence so small inputs do not
    # over-pad; then make the padded sequence divisible by both tile sizes.
    s_pad0 = _round_up(seq, 128)
    tq = min(tq, s_pad0)
    tk = min(tk, s_pad0)
    s_pad = _round_up(s_pad0, math.lcm(tq, tk))

    # bf16 MXU operands (native rate on v6e/v7x, half the HBM/VMEM bytes).
    x_p = jnp.zeros((s_pad, din_pad), jnp.float32).at[:seq, :d_in].set(
        x.astype(jnp.float32)).astype(jnp.bfloat16)

    def _pad_w(w):
        return jnp.zeros((din_pad, d_pad), jnp.float32).at[:d_in, :d_out].set(
            w.astype(jnp.float32))

    w_q = _pad_w(w_query).astype(jnp.bfloat16)
    w_kv = jnp.concatenate([_pad_w(w_key), _pad_w(w_value)],
                           axis=1).astype(jnp.bfloat16)      # [din_pad, 2*d_pad]

    # ------------------------- K/V projection (once) ------------------------
    t_proj = min(256, s_pad)
    proj_cost = pl.CostEstimate(
        flops=2 * s_pad * din_pad * 2 * d_pad,
        transcendentals=0,
        bytes_accessed=2 * (s_pad * din_pad + din_pad * 2 * d_pad
                            + 2 * s_pad * d_pad))
    k_pad, v_pad = pl.pallas_call(
        functools.partial(_kv_proj_kernel, d_pad=d_pad),
        out_shape=(jax.ShapeDtypeStruct((s_pad, d_pad), jnp.bfloat16),
                   jax.ShapeDtypeStruct((s_pad, d_pad), jnp.bfloat16)),
        grid_spec=pltpu.PrefetchScalarGridSpec(
            num_scalar_prefetch=0,
            grid=(s_pad // t_proj,),
            in_specs=[
                pl.BlockSpec((t_proj, din_pad), lambda i: (i, 0)),
                pl.BlockSpec((din_pad, 2 * d_pad), lambda i: (0, 0)),
            ],
            out_specs=[
                pl.BlockSpec((t_proj, d_pad), lambda i: (i, 0)),
                pl.BlockSpec((t_proj, d_pad), lambda i: (i, 0)),
            ]),
        compiler_params=pltpu.CompilerParams(
            dimension_semantics=("parallel",)),
        cost_estimate=proj_cost,
    )(x_p, w_kv)

    # ----------------------------- flash attention --------------------------
    scale = 1.0 / float(d_out) ** 0.5      # keys.shape[-1] ** 0.5
    need_mask = (s_pad != seq)
    num_q = s_pad // tq
    num_k = s_pad // tk
    grid = (num_q, num_k)

    kernel = functools.partial(_flash_attn_kernel, scale=scale, seq_len=seq,
                               tk=tk, need_mask=need_mask)

    # CostEstimate reflects the actual data flow (projection once, K/V re-read
    # once per Q tile along the arbitrary axis).
    flops = (2 * s_pad * din_pad * d_pad          # Q projection (once total)
             + 2 * s_pad * s_pad * d_pad          # Q @ K^T
             + 2 * s_pad * s_pad * d_pad)         # P @ V
    bytes_accessed = (2 * s_pad * din_pad         # x rows (bf16), once per Q tile
                      + 2 * din_pad * d_pad       # W_q (bf16)
                      + num_q * 2 * (2 * s_pad * d_pad)   # K,V bf16, per Q tile
                      + 4 * s_pad * d_pad)        # output (f32)
    cost = pl.CostEstimate(flops=flops,
                           transcendentals=s_pad * s_pad + 2 * s_pad,
                           bytes_accessed=bytes_accessed)

    kv_map = lambda qi, ki: (ki, 0)
    if num_k >= 3:
        # Deeper pipeline on the per-ki K/V DMAs: cheap VMEM, hides the copy
        # when per-step compute is short (small d_pad).
        k_spec = pl.BlockSpec((tk, d_pad), kv_map, pipeline_mode=pl.Buffered(3))
        v_spec = pl.BlockSpec((tk, d_pad), kv_map, pipeline_mode=pl.Buffered(3))
    else:
        k_spec = pl.BlockSpec((tk, d_pad), kv_map)
        v_spec = pl.BlockSpec((tk, d_pad), kv_map)

    # Explicit VMEM budget (so large tiles are not capped by the 32 MiB scoped
    # default, and the request stays reasonable on v7x's 64 MiB physical VMEM).
    bf, f4 = 2, 4
    vmem_need = (2 * tq * din_pad * bf            # xq blocks (double-buffered)
                 + 2 * din_pad * d_pad * bf       # W_q block
                 + 2 * (3 * tk * d_pad * bf)      # K + V blocks (<=3 buffers)
                 + 2 * tq * d_pad * f4            # output blocks
                 + tq * d_pad * bf                # Q scratch (bf16)
                 + 2 * tq * 128 * f4              # m, l scratch (lane-padded)
                 + tq * d_pad * f4)               # accumulator scratch
    vmem_limit = int(min(100 * 1024 * 1024,
                         max(32 * 1024 * 1024, 2 * vmem_need)))

    out = pl.pallas_call(
        kernel,
        out_shape=jax.ShapeDtypeStruct((s_pad, d_pad), jnp.float32),
        grid_spec=pltpu.PrefetchScalarGridSpec(
            num_scalar_prefetch=0,
            grid=grid,
            in_specs=[
                pl.BlockSpec((tq, din_pad), lambda qi, ki: (qi, 0)),    # x rows for Q
                pl.BlockSpec((din_pad, d_pad), lambda qi, ki: (0, 0)),  # W_q
                k_spec,                                                 # K tile
                v_spec,                                                 # V tile
            ],
            out_specs=pl.BlockSpec((tq, d_pad), lambda qi, ki: (qi, 0)),
            scratch_shapes=[
                pltpu.VMEM((tq, d_pad), jnp.bfloat16),   # scaled Q tile
                pltpu.VMEM((tq, 1), jnp.float32),        # running max
                pltpu.VMEM((tq, 1), jnp.float32),        # running denominator
                pltpu.VMEM((tq, d_pad), jnp.float32),    # output accumulator
            ],
        ),
        compiler_params=pltpu.CompilerParams(
            dimension_semantics=("parallel", "arbitrary"),
            vmem_limit_bytes=vmem_limit),
        cost_estimate=cost,
    )(x_p, w_q, k_pad, v_pad)

    return out[:seq, :d_out]


def _reference(x, wq, wk, wv):
    q = x @ wq
    k = x @ wk
    v = x @ wv
    w = jax.nn.softmax((q @ k.T) / (k.shape[-1] ** 0.5), axis=-1)
    return w @ v


if __name__ == "__main__":
    # Shapes from the module spec: inputs is [6, 3], d_out = 2, qkv_bias=False.
    inputs = jnp.array([[0.43, 0.15, 0.89],
                        [0.55, 0.87, 0.66],
                        [0.57, 0.85, 0.64],
                        [0.22, 0.58, 0.33],
                        [0.77, 0.25, 0.10],
                        [0.05, 0.80, 0.55]], dtype=jnp.float32)
    d_in = inputs.shape[1]
    d_out = 2

    key = jax.random.PRNGKey(0)
    kq, kk, kv = jax.random.split(key, 3)
    # Stored as [d_in, d_out] == nn.Linear.weight.T, so forward is x @ W.
    limit = 1.0 / (d_in ** 0.5)  # nn.Linear default init range
    w_query = jax.random.uniform(kq, (d_in, d_out), jnp.float32, -limit, limit)
    w_key = jax.random.uniform(kk, (d_in, d_out), jnp.float32, -limit, limit)
    w_value = jax.random.uniform(kv, (d_in, d_out), jnp.float32, -limit, limit)

    out = self_attention_v2(inputs, w_query, w_key, w_value)
    out = jax.block_until_ready(out)

    ref = _reference(inputs, w_query, w_key, w_value)
    assert out.shape == (inputs.shape[0], d_out)
    # bf16 MXU operands (f32 accumulation / softmax) -> relaxed tolerance.
    assert jnp.all(jnp.isfinite(out)), "non-finite output"
    assert jnp.allclose(out, ref, atol=2e-2, rtol=2e-2), "mismatch vs reference"

    print("KERNEL_OK")
</pallas_src>

<mosaic_0001>
module attributes {stable_mosaic.version = 11 : i64} {
  func.func @_kv_proj_kernel(%arg0: i32, %arg1: memref<128x128xbf16, #tpu.memory_space<vmem>>, %arg2: memref<128x256xbf16, #tpu.memory_space<vmem>>, %arg3: memref<128x128xbf16, #tpu.memory_space<vmem>>, %arg4: memref<128x128xbf16, #tpu.memory_space<vmem>>) attributes {dimension_semantics = [#tpu.dimension_semantics<parallel>], iteration_bounds = array<i64: 1>, scalar_prefetch = 0 : i64, scratch_operands = 0 : i64, tpu.core_type = #tpu.core_type<tc>, window_params = [{transform_indices = @transform_0, window_bounds = array<i64: 128, 128>}, {pipeline_mode = #tpu.pipeline_mode<synchronous>, transform_indices = @transform_1, window_bounds = array<i64: 128, 256>}, {transform_indices = @transform_2, window_bounds = array<i64: 128, 128>}, {transform_indices = @transform_3, window_bounds = array<i64: 128, 128>}]} {
    %c0 = arith.constant 0 : index
    %c0_0 = arith.constant 0 : index
    %0 = vector.load %arg1[%c0, %c0_0] : memref<128x128xbf16, #tpu.memory_space<vmem>>, vector<128x128xbf16>
    %c0_1 = arith.constant 0 : index
    %c0_2 = arith.constant 0 : index
    %1 = vector.load %arg2[%c0_1, %c0_2] : memref<128x256xbf16, #tpu.memory_space<vmem>>, vector<128x256xbf16>
    %cst = arith.constant dense<0.000000e+00> : vector<128x256xf32>
    %2 = tpu.matmul %0, %1, %cst {dimension_numbers = #tpu.dot_dimension_numbers<[1], [0], [0], [1], [0, 0, 1, 1], [], []>} : vector<128x128xbf16>, vector<128x256xbf16>, vector<128x256xf32> -> vector<128x256xf32>
    %3 = vector.extract_strided_slice %2 {offsets = [0, 0], sizes = [128, 128], strides = [1, 1]} : vector<128x256xf32> to vector<128x128xf32>
    %4 = arith.truncf %3 : vector<128x128xf32> to vector<128x128xbf16>
    %c0_3 = arith.constant 0 : index
    %c0_4 = arith.constant 0 : index
    %5 = vector.load %arg3[%c0_3, %c0_4] : memref<128x128xbf16, #tpu.memory_space<vmem>>, vector<128x128xbf16>
    tpu.vector_store %arg3[%c0_3, %c0_4], %4 {strides = array<i32>} : memref<128x128xbf16, #tpu.memory_space<vmem>>, vector<128x128xbf16>,
    %6 = vector.extract_strided_slice %2 {offsets = [0, 128], sizes = [128, 128], strides = [1, 1]} : vector<128x256xf32> to vector<128x128xf32>
    %7 = arith.truncf %6 : vector<128x128xf32> to vector<128x128xbf16>
    %c0_5 = arith.constant 0 : index
    %c0_6 = arith.constant 0 : index
    %8 = vector.load %arg4[%c0_5, %c0_6] : memref<128x128xbf16, #tpu.memory_space<vmem>>, vector<128x128xbf16>
    tpu.vector_store %arg4[%c0_5, %c0_6], %7 {strides = array<i32>} : memref<128x128xbf16, #tpu.memory_space<vmem>>, vector<128x128xbf16>,
    return
  }
  func.func @transform_0(%arg0: i32) -> (i32, i32) {
    %c0_i32 = arith.constant 0 : i32
    %c0_i32_0 = arith.constant 0 : i32
    return %arg0, %c0_i32 : i32, i32
  }
  func.func @transform_1(%arg0: i32) -> (i32, i32) {
    %c0_i32 = arith.constant 0 : i32
    %c0_i32_0 = arith.constant 0 : i32
    %c0_i32_1 = arith.constant 0 : i32
    return %c0_i32, %c0_i32_0 : i32, i32
  }
  func.func @transform_2(%arg0: i32) -> (i32, i32) {
    %c0_i32 = arith.constant 0 : i32
    %c0_i32_0 = arith.constant 0 : i32
    return %arg0, %c0_i32 : i32, i32
  }
  func.func @transform_3(%arg0: i32) -> (i32, i32) {
    %c0_i32 = arith.constant 0 : i32
    %c0_i32_0 = arith.constant 0 : i32
    return %arg0, %c0_i32 : i32, i32
  }
}

</mosaic_0001>

<bundles_post_ra>
// kernel: tpu_custom_call.1
= control target key start
LH: loop header
LB: loop body
LE: loop exit
PB: predicated region body
PF: predicated region fallthrough
CT: control target
= control target key end

     0   :  { %9 = vsyncpa [#allocation3], 0  ;;  %s798_s0 = inlined_call_operand.hbm [shape: bf16[128,128], index: 0, kind: input, shape index: {}]   ;;  %s799_s1 = inlined_call_operand.hbm [shape: bf16[128,256], index: 1, kind: input, shape index: {}]   ;;  %s800_s2 = inlined_call_operand.hbm [shape: bf16[128,128], index: 2, kind: output, shape index: {0}]   ;;  %s801_s3 = inlined_call_operand.hbm [shape: bf16[128,128], index: 3, kind: output, shape index: {1}]  }
   0x1   :  { %10 = vsyncpa [#allocation6], 0 }
   0x2   :  { %11 = vsyncpa [#allocation4], 0 }
   0x3   :  { %12 = vsyncpa [#allocation9], 0  ;;  %s17_s14 = sshll.u32 %s798_s0, 4  ;;  %s749_s15 = smov [#allocation2]   ;;  %s18_s14 = int_to_ptr.hbm [resolvable:$true] %s17_s14 }
   0x4   :  { %s19_s16 = sshll.u32 %s749_s15, 4  ;;  %s30_s19 = sshll.u32 %s799_s1, 4  ;;  %s20_s16 = int_to_ptr.vmem [resolvable:$true] %s19_s16  ;;  %s31_s19 = int_to_ptr.hbm [resolvable:$true] %s30_s19 }
   0x5   :  { %s750_s20 = smov 64   ;;  %s751_s21 = smov 4  }
   0x6   :  { %25 = dma.hbm_to_vmem [thread:$0]  %s18_s14, 1024, %s20_s16, [#allocation3], %s750_s20, %s750_s20, %s751_s21  }
   0x7   :  { %s752_s22 = smov [#allocation5]   ;;  %s753_s24 = smov 128  }
   0x8   :  { %s32_s23 = sshll.u32 %s752_s22, 4  ;;  %s754_s0 = smov 8   ;;  %s33_s23 = int_to_ptr.vmem [resolvable:$true] %s32_s23 }
   0x9   :  { %38 = dma.hbm_to_vmem [thread:$0]  %s31_s19, 2048, %s33_s23, [#allocation6], %s753_s24, %s753_s24, %s754_s0  }
   0xa   :  { %741 = dma.done.wait [#allocation3], 1024  }
   0xb   :  { %742 = vsyncadd [#allocation3], 4294966272 }
   0xc   :  { %743 = dma.done.wait [#allocation6], 2048  }
   0xd   :  { %744 = vsyncadd [#allocation6], 4294965248  ;;  %v497_v0 = vld [vmem:[#allocation5 + $0x70] sm:$0xf]  ;;  %v526_v1 = vld [vmem:[#allocation5 + $0x74] sm:$0xf0] }
   0xe   :  { %v525_v2 = vld [vmem:[#allocation5 + $0x74] sm:$0xf]  ;;  %v498_v3 = vor.u32 %v526_v1, %v497_v0  ;;  %v499_v4 = vld [vmem:[#allocation5 + $0x78] sm:$0xf0]  ;;  %v489_v5 = vld [vmem:[#allocation5 + $0x60] sm:$0xf] }
   0xf   :  { %v524_v6 = vld [vmem:[#allocation5 + $0x64] sm:$0xf0]  ;;  %v502_v7 = vor.u32 %v525_v2, %v499_v4  ;;  %v523_v8 = vld [vmem:[#allocation5 + $0x64] sm:$0xf]  ;;  %v491_v9 = vld [vmem:[#allocation5 + $0x68] sm:$0xf0] }
  0x10   :  { %207 = vmatpush.bf16.msra.mxu0 %v498_v3  ;;  %621 = vmatpush.bf16.msra.mxu2 %v498_v3  ;;  %v490_v10 = vor.u32 %v524_v6, %v489_v5  ;;  %v494_v11 = vor.u32 %v523_v8, %v491_v9  ;;  %v481_v12 = vld [vmem:[#allocation5 + $0x50] sm:$0xf]  ;;  %v522_v13 = vld [vmem:[#allocation5 + $0x54] sm:$0xf0]  ;;  %v521_v14 = vld [vmem:[#allocation5 + $0x54] sm:$0xf] }
  0x11   :  { %256 = vmatpush.bf16.msra.mxu1 %v502_v7  ;;  %629 = vmatpush.bf16.msra.mxu3 %v502_v7  ;;  %v483_v15 = vld [vmem:[#allocation5 + $0x58] sm:$0xf0]  ;;  %v482_v16 = vor.u32 %v522_v13, %v481_v12  ;;  %v473_v18 = vld [vmem:[#allocation5 + $0x40] sm:$0xf]  ;;  %v520_v19 = vld [vmem:[#allocation5 + $0x44] sm:$0xf0] }
  0x12   :  { %v486_v17 = vor.u32 %v521_v14, %v483_v15  ;;  %v519_v20 = vld [vmem:[#allocation5 + $0x44] sm:$0xf]  ;;  %v475_v21 = vld [vmem:[#allocation5 + $0x48] sm:$0xf0]  ;;  %v474_v22 = vor.u32 %v520_v19, %v473_v18  ;;  %v465_v24 = vld [vmem:[#allocation5 + $0x30] sm:$0xf] }
  0x13   :  { %v478_v23 = vor.u32 %v519_v20, %v475_v21  ;;  %v518_v25 = vld [vmem:[#allocation5 + $0x34] sm:$0xf0]  ;;  %v517_v26 = vld [vmem:[#allocation5 + $0x34] sm:$0xf]  ;;  %v467_v27 = vld [vmem:[#allocation5 + $0x38] sm:$0xf0] }
  0x14   :  { %208 = vmatpush.bf16.msra.mxu0 %v490_v10  ;;  %622 = vmatpush.bf16.msra.mxu2 %v490_v10  ;;  %v466_v28 = vor.u32 %v518_v25, %v465_v24  ;;  %v470_v29 = vor.u32 %v517_v26, %v467_v27  ;;  %v457_v30 = vld [vmem:[#allocation5 + $0x20] sm:$0xf]  ;;  %v516_v31 = vld [vmem:[#allocation5 + $0x24] sm:$0xf0]  ;;  %v515_v32 = vld [vmem:[#allocation5 + $0x24] sm:$0xf] }
  0x15   :  { %257 = vmatpush.bf16.msra.mxu1 %v494_v11  ;;  %630 = vmatpush.bf16.msra.mxu3 %v494_v11  ;;  %v459_v33 = vld [vmem:[#allocation5 + $0x28] sm:$0xf0]  ;;  %v458_v34 = vor.u32 %v516_v31, %v457_v30  ;;  %v449_v36 = vld [vmem:[#allocation5 + $0x10] sm:$0xf]  ;;  %v514_v37 = vld [vmem:[#allocation5 + $0x14] sm:$0xf0] }
  0x16   :  { %v462_v35 = vor.u32 %v515_v32, %v459_v33  ;;  %v513_v38 = vld [vmem:[#allocation5 + $0x14] sm:$0xf]  ;;  %v451_v39 = vld [vmem:[#allocation5 + $0x18] sm:$0xf0]  ;;  %v450_v40 = vor.u32 %v514_v37, %v449_v36  ;;  %v441_v42 = vld [vmem:[#allocation5] sm:$0xf] }
  0x17   :  { %v454_v41 = vor.u32 %v513_v38, %v451_v39  ;;  %v512_v43 = vld [vmem:[#allocation5 + $0x4] sm:$0xf0]  ;;  %v511_v44 = vld [vmem:[#allocation5 + $0x4] sm:$0xf]  ;;  %v443_v45 = vld [vmem:[#allocation5 + $0x8] sm:$0xf0] }
  0x18   :  { %209 = vmatpush.bf16.msra.mxu0 %v482_v16  ;;  %623 = vmatpush.bf16.msra.mxu2 %v482_v16  ;;  %v442_v46 = vor.u32 %v512_v43, %v441_v42  ;;  %v446_v47 = vor.u32 %v511_v44, %v443_v45  ;;  %v503_v48 = vld [vmem:[#allocation2] sm:$0xff]  ;;  %v504_v50 = vld [vmem:[#allocation2 + $0x8] sm:$0xff]  ;;  %v505_v52 = vld [vmem:[#allocation2 + $0x10] sm:$0xff]  ;;  %s755_s1 = smov [#allocation7]   ;;  %s375_s28 = sshll.u32 %s800_s2, 4  ;;  %s376_s28 = int_to_ptr.hbm [resolvable:$true] %s375_s28 }
  0x19   :  { %258 = vmatpush.bf16.msra.mxu1 %v486_v17  ;;  %631 = vmatpush.bf16.msra.mxu3 %v486_v17  ;;  %v507_v49 = vld [vmem:[#allocation2 + $0x20] sm:$0xff]  ;;  %v508_v51 = vld [vmem:[#allocation2 + $0x28] sm:$0xff]  ;;  %v509_v53 = vld [vmem:[#allocation2 + $0x30] sm:$0xff]  ;;  %s373_s25 = sshll.u32 %s755_s1, 4  ;;  %s756_s29 = smov [#allocation8]   ;;  %s374_s25 = int_to_ptr.vmem [resolvable:$true] %s373_s25 }
  0x1a   :  { %v506_v54 = vld [vmem:[#allocation2 + $0x18] sm:$0xff]  ;;  %s386_s30 = sshll.u32 %s756_s29, 4  ;;  %s388_s6 = sshll.u32 %s801_s3, 4  ;;  %s387_s30 = int_to_ptr.vmem [resolvable:$true] %s386_s30  ;;  %s389_s6 = int_to_ptr.hbm [resolvable:$true] %s388_s6 }
  0x1b   :  { %v510_v55 = vld [vmem:[#allocation2 + $0x38] sm:$0xff] }
  0x1c   :  { %210 = vmatpush.bf16.msra.mxu0 %v474_v22  ;;  %624 = vmatpush.bf16.msra.mxu2 %v474_v22 }
  0x1d   :  { %259 = vmatpush.bf16.msra.mxu1 %v478_v23  ;;  %632 = vmatpush.bf16.msra.mxu3 %v478_v23 }
  0x20   :  { %211 = vmatpush.bf16.msra.mxu0 %v466_v28  ;;  %625 = vmatpush.bf16.msra.mxu2 %v466_v28 }
  0x21   :  { %260 = vmatpush.bf16.msra.mxu1 %v470_v29  ;;  %633 = vmatpush.bf16.msra.mxu3 %v470_v29 }
  0x24   :  { %212 = vmatpush.bf16.msra.mxu0 %v458_v34  ;;  %626 = vmatpush.bf16.msra.mxu2 %v458_v34 }
  0x25   :  { %261 = vmatpush.bf16.msra.mxu1 %v462_v35  ;;  %634 = vmatpush.bf16.msra.mxu3 %v462_v35 }
  0x28   :  { %213 = vmatpush.bf16.msra.mxu0 %v450_v40  ;;  %627 = vmatpush.bf16.msra.mxu2 %v450_v40 }
  0x29   :  { %262 = vmatpush.bf16.msra.mxu1 %v454_v41  ;;  %635 = vmatpush.bf16.msra.mxu3 %v454_v41 }
  0x2c   :  { %214 = vmatpush.bf16.msra.mxu0 %v442_v46  ;;  %628 = vmatpush.bf16.msra.mxu2 %v442_v46 }
  0x2d   :  { %263 = vmatpush.bf16.msra.mxu1 %v446_v47  ;;  %636 = vmatpush.bf16.msra.mxu3 %v446_v47 }
  0x2f   :  { %215 = vmatmul.bf16.vlgmr.msra.gmra.mxu0 %v503_v48  ;;  %235 = vmatmul.bf16.vlgmr.msra.gmra.mxu2 %v507_v49 }
  0x30   :  { %264 = vmatmul.bf16.vlgmr.msra.gmra.mxu1 %v503_v48  ;;  %284 = vmatmul.bf16.vlgmr.msra.gmra.mxu3 %v507_v49 }
  0x3f   :  { %220 = vmatmul.bf16.gmra.mxu0 %v504_v50  ;;  %240 = vmatmul.bf16.gmra.mxu2 %v508_v51 }
  0x40   :  { %269 = vmatmul.bf16.gmra.mxu1 %v504_v50  ;;  %289 = vmatmul.bf16.gmra.mxu3 %v508_v51 }
  0x4f   :  { %225 = vmatmul.bf16.gmra.mxu0 %v505_v52  ;;  %245 = vmatmul.bf16.gmra.mxu2 %v509_v53 }
  0x50   :  { %274 = vmatmul.bf16.gmra.mxu1 %v505_v52  ;;  %294 = vmatmul.bf16.gmra.mxu3 %v509_v53 }
  0x5f   :  { %230 = vmatmul.bf16.gmra.mxu0 %v506_v54  ;;  %250 = vmatmul.bf16.gmra.mxu2 %v510_v55 }
  0x60   :  { %279 = vmatmul.bf16.gmra.mxu1 %v506_v54  ;;  %299 = vmatmul.bf16.gmra.mxu3 %v510_v55 }
  0xac   :  { %v216_v56 = vpop.f32.mrf.mxu0 }
  0xad   :  { %v265_v57 = vpop.f32.mrf.mxu1 }
  0xb2   :  { %v236_v58 = vpop.f32.mrf.mxu2 }
  0xb3   :  { %v285_v59 = vpop.f32.mrf.mxu3 }
  0xb4   :  { %v218_v60 = vpop.f32.mrf.mxu0 }
  0xb5   :  { %v530_v61 = vpack.c.bf16 %v218_v60, %v216_v56  ;;  %v267_v62 = vpop.f32.mrf.mxu1 }
  0xb6   :  { %v570_v63 = vpack.c.bf16 %v267_v62, %v265_v57 }
  0xb7   :  { %531 = vst [vmem:[#allocation7] sm:$0xff] %v530_v61  }
  0xb8   :  { %571 = vst [vmem:[#allocation8] sm:$0xff] %v570_v63  }
  0xba   :  { %v238_v0 = vpop.f32.mrf.mxu2 }
  0xbb   :  { %v550_v1 = vpack.c.bf16 %v238_v0, %v236_v58  ;;  %v287_v2 = vpop.f32.mrf.mxu3 }
  0xbc   :  { %v590_v3 = vpack.c.bf16 %v287_v2, %v285_v59  ;;  %v221_v4 = vpop.f32.mrf.mxu0 }
  0xbd   :  { %610 = vst [vmem:[#allocation7 + $0x20] sm:$0xff] %v550_v1   ;;  %v270_v5 = vpop.f32.mrf.mxu1 }
  0xbe   :  { %617 = vst [vmem:[#allocation8 + $0x20] sm:$0xff] %v590_v3  }
  0xc2   :  { %v241_v6 = vpop.f32.mrf.mxu2 }
  0xc3   :  { %v290_v7 = vpop.f32.mrf.mxu3 }
  0xc4   :  { %v223_v8 = vpop.f32.mrf.mxu0 }
  0xc5   :  { %v535_v9 = vpack.c.bf16 %v223_v8, %v221_v4  ;;  %v272_v10 = vpop.f32.mrf.mxu1 }
  0xc6   :  { %v575_v11 = vpack.c.bf16 %v272_v10, %v270_v5 }
  0xc7   :  { %607 = vst [vmem:[#allocation7 + $0x8] sm:$0xff] %v535_v9  }
  0xc8   :  { %614 = vst [vmem:[#allocation8 + $0x8] sm:$0xff] %v575_v11  }
  0xca   :  { %v243_v12 = vpop.f32.mrf.mxu2 }
  0xcb   :  { %v555_v13 = vpack.c.bf16 %v243_v12, %v241_v6  ;;  %v292_v14 = vpop.f32.mrf.mxu3 }
  0xcc   :  { %v595_v15 = vpack.c.bf16 %v292_v14, %v290_v7  ;;  %v226_v16 = vpop.f32.mrf.mxu0 }
  0xcd   :  { %611 = vst [vmem:[#allocation7 + $0x28] sm:$0xff] %v555_v13   ;;  %v275_v17 = vpop.f32.mrf.mxu1 }
  0xce   :  { %618 = vst [vmem:[#allocation8 + $0x28] sm:$0xff] %v595_v15  }
  0xd2   :  { %v246_v18 = vpop.f32.mrf.mxu2 }
  0xd3   :  { %v295_v19 = vpop.f32.mrf.mxu3 }
  0xd4   :  { %v228_v20 = vpop.f32.mrf.mxu0 }
  0xd5   :  { %v540_v21 = vpack.c.bf16 %v228_v20, %v226_v16  ;;  %v277_v22 = vpop.f32.mrf.mxu1 }
  0xd6   :  { %v580_v23 = vpack.c.bf16 %v277_v22, %v275_v17 }
  0xd7   :  { %608 = vst [vmem:[#allocation7 + $0x10] sm:$0xff] %v540_v21  }
  0xd8   :  { %615 = vst [vmem:[#allocation8 + $0x10] sm:$0xff] %v580_v23  }
  0xda   :  { %v248_v24 = vpop.f32.mrf.mxu2 }
  0xdb   :  { %v560_v25 = vpack.c.bf16 %v248_v24, %v246_v18  ;;  %v297_v26 = vpop.f32.mrf.mxu3 }
  0xdc   :  { %v600_v27 = vpack.c.bf16 %v297_v26, %v295_v19  ;;  %v231_v28 = vpop.f32.mrf.mxu0 }
  0xdd   :  { %612 = vst [vmem:[#allocation7 + $0x30] sm:$0xff] %v560_v25   ;;  %v280_v29 = vpop.f32.mrf.mxu1 }
  0xde   :  { %619 = vst [vmem:[#allocation8 + $0x30] sm:$0xff] %v600_v27  }
  0xe2   :  { %v251_v30 = vpop.f32.mrf.mxu2 }
  0xe3   :  { %v300_v31 = vpop.f32.mrf.mxu3 }
  0xe4   :  { %v233_v32 = vpop.f32.mrf.mxu0 }
  0xe5   :  { %v545_v33 = vpack.c.bf16 %v233_v32, %v231_v28  ;;  %v282_v34 = vpop.f32.mrf.mxu1 }
  0xe6   :  { %v585_v35 = vpack.c.bf16 %v282_v34, %v280_v29 }
  0xe7   :  { %609 = vst [vmem:[#allocation7 + $0x18] sm:$0xff] %v545_v33  }
  0xe8   :  { %616 = vst [vmem:[#allocation8 + $0x18] sm:$0xff] %v585_v35  }
  0xea   :  { %v253_v36 = vpop.f32.mrf.mxu2 }
  0xeb   :  { %v565_v37 = vpack.c.bf16 %v253_v36, %v251_v30  ;;  %v302_v38 = vpop.f32.mrf.mxu3 }
  0xec   :  { %v605_v39 = vpack.c.bf16 %v302_v38, %v300_v31 }
  0xed   :  { %613 = vst [vmem:[#allocation7 + $0x38] sm:$0xff] %v565_v37  }
  0xee   :  { %620 = vst [vmem:[#allocation8 + $0x38] sm:$0xff] %v605_v39   ;;  %381 = dma.vmem_to_hbm [thread:$0]  %s374_s25, 1024, %s376_s28, [#allocation4], %s750_s20, %s750_s20, %s751_s21  }
  0xef   :  { %394 = dma.vmem_to_hbm [thread:$0]  %s387_s30, 1024, %s389_s6, [#allocation9], %s750_s20, %s750_s20, %s751_s21  }
  0xf0   :  { %745 = dma.done.wait [#allocation4], 1024  }
  0xf1   :  { %746 = vsyncadd [#allocation4], 4294966272 }
  0xf2   :  { %747 = dma.done.wait [#allocation9], 1024  }
  0xf3   :  { %748 = vsyncadd [#allocation9], 4294966272 }
  0xf4   :  { %403 = vsyncpa [#allocation3], 1 }
  0xf5   :  { %404 = vsyncpa [#allocation6], 1 }
  0xf6   :  { %405 = vsyncpa [#allocation4], 1 }
  0xf7   :  { %406 = vsyncpa [#allocation9], 1 }

</bundles_post_ra>
